<compile_context>
chip_gen: v6e
topology: v6e:2x2x1
jax: 0.10.0
libtpu: 0.0.40
codegen_flags: <defaults>
</compile_context>

<pallas_src>
import jax
import jax.numpy as jnp
from jax import lax
from jax.experimental import pallas as pl
from jax.experimental.pallas import tpu as pltpu


def _matmul_bias_kernel(lhs_ref, w_ref, b_ref, o_ref):
    # lhs_ref: (K, Nt)    wrapper-side im2col patches, lane-dense (Nt % 128 == 0 or full)
    # w_ref:   (Cout, K)  OIHW weights flattened in the wrapper
    # b_ref:   (Cout, 1)  f32 bias
    # o_ref:   (Cout, Nt) lane-dense output slab
    acc = jnp.dot(w_ref[...], lhs_ref[...], preferred_element_type=jnp.float32)
    o_ref[...] = (acc + b_ref[...]).astype(o_ref.dtype)


def _pick_grid_steps(B, M, requested=None):
    """1 step on v5e/v6e (single TC); 2 steps on v7x (2 TCs) when layout allows."""
    if requested is None:
        try:
            kind = jax.devices()[0].device_kind.lower()
        except Exception:  # pragma: no cover - CPU/interpret fallback
            kind = ""
        requested = 2 if ("v7" in kind or "7x" in kind) else 1
    steps = max(1, min(int(requested), B))
    # Split on batch boundaries; each step's lane width (Bt*M) must be a
    # multiple of 128 (BlockSpec constraint) unless the block is the full array.
    while steps > 1 and (B % steps != 0 or ((B // steps) * M) % 128 != 0):
        steps -= 1
    return steps


def causal_conv2d_forward(x, weight, bias, *, kernel_size, stride=1,
                          dilation=1, pad_mode="constant", grid_steps=None):
    """Exact forward of CausalConv2d. x: NCHW (or 3-D, like the PyTorch module)."""
    if isinstance(kernel_size, int):
        kernel_size = (kernel_size, kernel_size)
    kT, kA = kernel_size
    if isinstance(stride, int):
        stride = (stride, stride)
    sH, sW = stride

    time_pad = dilation * (kT - 1)
    action_pad = kA // 2
    out_dtype = x.dtype

    # F.pad semantics: the 4-tuple pads the LAST two dims:
    #   W gets (time_pad, 0), H gets (action_pad, action_pad).
    # pad_mode fallback compares against x.shape[2] of the *un-padded* input,
    # exactly like the PyTorch module.
    mode = pad_mode if time_pad < x.shape[2] else "constant"
    jnp_mode = {"constant": "constant", "replicate": "edge",
                "reflect": "reflect", "circular": "wrap"}[mode]
    pad_width = [(0, 0)] * (x.ndim - 2) + [(action_pad, action_pad),
                                           (time_pad, 0)]
    if jnp_mode == "constant":
        x = jnp.pad(x, pad_width, mode="constant", constant_values=0)
    else:
        x = jnp.pad(x, pad_width, mode=jnp_mode)

    if x.ndim == 3:            # matches `if x.dim() == 3: x = x.unsqueeze(1)`
        x = x[:, None]

    B, Cin, Hp, Wp = x.shape
    Cout = weight.shape[0]
    H_out = (Hp - dilation * (kT - 1) - 1) // sH + 1
    W_out = (Wp - dilation * (kA - 1) - 1) // sW + 1
    M = H_out * W_out
    K = Cin * kT * kA
    N = B * M

    # ---- Wrapper-side im2col (XLA strided slices, fused with the pad). -------
    # k-order is k = cin*(kT*kA) + kh*kA + kw, which matches a plain OIHW
    # weight.reshape(Cout, K).  Strides/dilation are handled here, so the kernel
    # never does strided lane slices or cross-lane relayouts.
    taps = []
    for kh in range(kT):
        h0 = kh * dilation
        for kw in range(kA):
            w0 = kw * dilation
            taps.append(x[:, :,
                          h0:h0 + (H_out - 1) * sH + 1:sH,
                          w0:w0 + (W_out - 1) * sW + 1:sW])  # (B, Cin, H_out, W_out)
    patches = jnp.stack(taps, axis=2)                # (B, Cin, kT*kA, H_out, W_out)
    lhs = patches.reshape(B, K, M)                   # (B, K, M)
    lhs = jnp.moveaxis(lhs, 0, 1).reshape(K, N)      # (K, B*M), col = b*M + m

    w2 = weight.reshape(Cout, K)                     # OIHW flatten == k-order above
    b2 = bias.astype(jnp.float32).reshape(Cout, 1)

    steps = _pick_grid_steps(B, M, grid_steps)
    Nt = N // steps

    out = pl.pallas_call(
        _matmul_bias_kernel,
        out_shape=jax.ShapeDtypeStruct((Cout, N), out_dtype),
        grid=(steps,),
        in_specs=[
            pl.BlockSpec((K, Nt), lambda i: (0, i)),
            pl.BlockSpec((Cout, K), lambda i: (0, 0)),
            pl.BlockSpec((Cout, 1), lambda i: (0, 0)),
        ],
        out_specs=pl.BlockSpec((Cout, Nt), lambda i: (0, i)),
        compiler_params=pltpu.CompilerParams(
            dimension_semantics=("parallel",),
            vmem_limit_bytes=32 * 1024 * 1024),
    )(lhs, w2, b2)

    # (Cout, B*M) -> NCHW. Tiny wrapper-side transpose (layout plumbing in XLA).
    return jnp.transpose(out.reshape(Cout, B, H_out, W_out), (1, 0, 2, 3))


def _reference_causal_conv2d(x, weight, bias, *, kernel_size, stride=1,
                             dilation=1):
    """Pure-JAX reference (mirrors F.pad + nn.Conv2d of the PyTorch module)."""
    if isinstance(kernel_size, int):
        kernel_size = (kernel_size, kernel_size)
    kT, kA = kernel_size
    if isinstance(stride, int):
        stride = (stride, stride)
    time_pad = dilation * (kT - 1)
    action_pad = kA // 2
    out = lax.conv_general_dilated(
        x, weight,
        window_strides=stride,
        padding=[(action_pad, action_pad), (time_pad, 0)],  # (H pads, W pads)
        rhs_dilation=(dilation, dilation),
        dimension_numbers=("NCHW", "OIHW", "NCHW"))
    return out + bias[None, :, None, None]


if __name__ == "__main__":
    key = jax.random.PRNGKey(0)
    kx, kw, kb = jax.random.split(key, 3)

    # module config: in_channels=4, out_channels=8, kernel_size=3, stride=1
    B, Cin, H, W = 2, 4, 16, 16
    Cout, kernel_size, stride, dilation = 8, 3, 1, 1

    x = jax.random.normal(kx, (B, Cin, H, W), dtype=jnp.float32)
    weight = 0.02 * jax.random.truncated_normal(
        kw, -2.0, 2.0, (Cout, Cin, kernel_size, kernel_size), dtype=jnp.float32)
    bias = 0.1 * jax.random.normal(kb, (Cout,), dtype=jnp.float32)

    ref = _reference_causal_conv2d(x, weight, bias, kernel_size=kernel_size,
                                   stride=stride, dilation=dilation)

    # Default path: auto grid steps (1 on v5e/v6e, 2 on v7x).
    out = causal_conv2d_forward(x, weight, bias, kernel_size=kernel_size,
                                stride=stride, dilation=dilation,
                                pad_mode="constant")
    out = jax.block_until_ready(out)
    assert out.shape == (B, Cout, H, W), out.shape
    assert jnp.allclose(out, ref, atol=1e-5, rtol=1e-5), \
        float(jnp.max(jnp.abs(out - ref)))

    # Also verify the 2-step (v7x dual-TensorCore) grid split on any chip.
    out2 = causal_conv2d_forward(x, weight, bias, kernel_size=kernel_size,
                                 stride=stride, dilation=dilation,
                                 pad_mode="constant", grid_steps=2)
    out2 = jax.block_until_ready(out2)
    assert jnp.allclose(out2, ref, atol=1e-5, rtol=1e-5), \
        float(jnp.max(jnp.abs(out2 - ref)))

    print("KERNEL_OK")
</pallas_src>

<mosaic_0001>
module attributes {stable_mosaic.version = 11 : i64} {
  func.func @_matmul_bias_kernel(%arg0: i32, %arg1: memref<36x512xf32, #tpu.memory_space<vmem>>, %arg2: memref<8x36xf32, #tpu.memory_space<vmem>>, %arg3: memref<8x1xf32, #tpu.memory_space<vmem>>, %arg4: memref<8x512xf32, #tpu.memory_space<vmem>>) attributes {dimension_semantics = [#tpu.dimension_semantics<parallel>], iteration_bounds = array<i64: 1>, scalar_prefetch = 0 : i64, scratch_operands = 0 : i64, tpu.core_type = #tpu.core_type<tc>, window_params = [{transform_indices = @transform_0, window_bounds = array<i64: 36, 512>}, {pipeline_mode = #tpu.pipeline_mode<synchronous>, transform_indices = @transform_1, window_bounds = array<i64: 8, 36>}, {pipeline_mode = #tpu.pipeline_mode<synchronous>, transform_indices = @transform_2, window_bounds = array<i64: 8, 1>}, {transform_indices = @transform_3, window_bounds = array<i64: 8, 512>}]} {
    %c0 = arith.constant 0 : index
    %c0_0 = arith.constant 0 : index
    %0 = vector.load %arg2[%c0, %c0_0] : memref<8x36xf32, #tpu.memory_space<vmem>>, vector<8x36xf32>
    %c0_1 = arith.constant 0 : index
    %c0_2 = arith.constant 0 : index
    %1 = vector.load %arg1[%c0_1, %c0_2] : memref<36x512xf32, #tpu.memory_space<vmem>>, vector<36x512xf32>
    %cst = arith.constant dense<0.000000e+00> : vector<8x512xf32>
    %2 = tpu.matmul %0, %1, %cst {dimension_numbers = #tpu.dot_dimension_numbers<[1], [0], [0], [1], [0, 0, 1, 1], [], []>} : vector<8x36xf32>, vector<36x512xf32>, vector<8x512xf32> -> vector<8x512xf32>
    %c0_3 = arith.constant 0 : index
    %c0_4 = arith.constant 0 : index
    %3 = vector.load %arg3[%c0_3, %c0_4] : memref<8x1xf32, #tpu.memory_space<vmem>>, vector<8x1xf32>
    %4 = vector.broadcast %3 : vector<8x1xf32> to vector<8x512xf32>
    %5 = arith.addf %2, %4 : vector<8x512xf32>
    %c0_5 = arith.constant 0 : index
    %c0_6 = arith.constant 0 : index
    %6 = vector.load %arg4[%c0_5, %c0_6] : memref<8x512xf32, #tpu.memory_space<vmem>>, vector<8x512xf32>
    tpu.vector_store %arg4[%c0_5, %c0_6], %5 {strides = array<i32>} : memref<8x512xf32, #tpu.memory_space<vmem>>, vector<8x512xf32>,
    return
  }
  func.func @transform_0(%arg0: i32) -> (i32, i32) {
    %c0_i32 = arith.constant 0 : i32
    %c0_i32_0 = arith.constant 0 : i32
    return %c0_i32, %arg0 : i32, i32
  }
  func.func @transform_1(%arg0: i32) -> (i32, i32) {
    %c0_i32 = arith.constant 0 : i32
    %c0_i32_0 = arith.constant 0 : i32
    %c0_i32_1 = arith.constant 0 : i32
    return %c0_i32, %c0_i32_0 : i32, i32
  }
  func.func @transform_2(%arg0: i32) -> (i32, i32) {
    %c0_i32 = arith.constant 0 : i32
    %c0_i32_0 = arith.constant 0 : i32
    %c0_i32_1 = arith.constant 0 : i32
    return %c0_i32, %c0_i32_0 : i32, i32
  }
  func.func @transform_3(%arg0: i32) -> (i32, i32) {
    %c0_i32 = arith.constant 0 : i32
    %c0_i32_0 = arith.constant 0 : i32
    return %c0_i32, %arg0 : i32, i32
  }
}

</mosaic_0001>

<bundles_post_ra>
// kernel: tpu_custom_call.1
= control target key start
LH: loop header
LB: loop body
LE: loop exit
PB: predicated region body
PF: predicated region fallthrough
CT: control target
= control target key end

     0   :  { %8 = vsyncpa [#allocation3], 0  ;;  %s329_s0 = inlined_call_operand.hbm [shape: f32[36,512], index: 0, kind: input, shape index: {}]   ;;  %s330_s1 = inlined_call_operand.vmem [shape: f32[8,36], index: 1, kind: input, shape index: {}]   ;;  %s331_s2 = inlined_call_operand.vmem [shape: f32[8,1], index: 2, kind: input, shape index: {}]   ;;  %s332_s3 = inlined_call_operand.hbm [shape: f32[8,512], index: 3, kind: output, shape index: {}]  }
   0x1   :  { %9 = vsyncpa [#allocation4], 0  ;;  %s291_s12 = smov [#allocation2]  }
   0x2   :  { %s15_s13 = sshll.u32 %s291_s12, 4  ;;  %s16_s13 = int_to_ptr.vmem [resolvable:$true] %s15_s13 }
   0x3   :  { %s255_s14 = scalar_lea.vmem %s16_s13, 2560  ;;  %p260_p1 = scmp.lt.s32.totalorder %s16_s13, %s16_s13 }
   0x4   :  { %p256_p0 = scmp.ne.s32.totalorder %s16_s13, %s255_s14  ;;  %p261_p2 = scmp.lt.s32.totalorder %s255_s14, %s255_s14 }
   0x6   :  { %p262_p3 = por %p261_p2, %p260_p1 }
   0x8   :  { %p263_p4 = pnand %p262_p3, %p256_p0 }
   0xa   :  { %266 = shalt.err (!%p263_p4)
}
   0xb   :  { %s292_s15 = smov 512   ;;  %s293_s16 = smov 32  }
   0xc   :  { %21 = dma.hbm_to_vmem [thread:$0]  %s329_s0, 2560, %s16_s13, [#allocation3], %s292_s15, %s292_s15, %s293_s16  }
   0xd   :  { %287 = dma.done.wait [#allocation3], 2560  }
   0xe   :  { %288 = vsyncadd [#allocation3], 4294964736  ;;  %v294_v0 = vmov 0.0   ;;  %v295_v1 = vmov 0   ;;  %vm60_vm0 = vcmask 1043456   ;;  %v43_v6 = vld [vmem:[#allocation2 + $0x68] sm:$0xff] }
   0xf   :  { %137 = vmatprep.mubr.f32.mxu0 %v294_v0  ;;  %208 = vmatprep.mubr.f32.mxu1 %v294_v0  ;;  %v47_v2 = vld [vmem:[#allocation2 + $0x88] sm:$0xf]  ;;  %v49_v3 = vld [vmem:[#allocation2 + $0x98] sm:$0xf]  ;;  %v46_v4 = vld [vmem:[#allocation2 + $0x80] sm:$0xf] }
  0x10   :  { %246 = vset.pattern.permute.xlu0 %v295_v1  ;;  %234 = vmatprep.subr.msk.mxu0 %vm60_vm0, %v47_v2  ;;  %v48_v5 = vld [vmem:[#allocation2 + $0x90] sm:$0xf]  ;;  %v45_v7 = vld [vmem:[#allocation2 + $0x78] sm:$0xff]  ;;  %v42_v8 = vld [vmem:[#allocation2 + $0x60] sm:$0xff]  ;;  %vm56_vm1 = vcmask 293888   ;;  %s296_s22 = smov [#allocation5]  }
  0x11   :  { %237 = vmatprep.subr.msk.mxu1 %vm60_vm0, %v49_v3  ;;  %235 = vmatpush1.msk.msra.mxu0 %vm60_vm0, %v46_v4  ;;  %v44_v9 = vld [vmem:[#allocation2 + $0x70] sm:$0xff]  ;;  %v39_v10 = vld [vmem:[#allocation2 + $0x48] sm:$0xff]  ;;  %v41_v11 = vld [vmem:[#allocation2 + $0x58] sm:$0xff]  ;;  %s225_s23 = sshll.u32 %s296_s22, 4  ;;  %s226_s23 = int_to_ptr.vmem [resolvable:$true] %s225_s23 }
  0x12   :  { %238 = vmatpush1.msk.msra.mxu1 %vm60_vm0, %v48_v5  ;;  %97 = vmatprep.subr.mxu0 %v43_v6  ;;  %v38_v12 = vld [vmem:[#allocation2 + $0x40] sm:$0xff]  ;;  %v40_v13 = vld [vmem:[#allocation2 + $0x50] sm:$0xff]  ;;  %v35_v14 = vld [vmem:[#allocation2 + $0x28] sm:$0xff]  ;;  %p272_p6 = scmp.lt.s32.totalorder %s226_s23, %s226_s23 }
  0x13   :  { %168 = vmatprep.subr.mxu1 %v45_v7  ;;  %98 = vmatpush1.msra.mxu0 %v42_v8  ;;  %v37_v15 = vld [vmem:[#allocation2 + $0x38] sm:$0xff]  ;;  %v34_v16 = vld [vmem:[#allocation2 + $0x20] sm:$0xff]  ;;  %v36_v17 = vld [vmem:[#allocation2 + $0x30] sm:$0xff] }
  0x14   :  { %169 = vmatpush1.msra.mxu1 %v44_v9  ;;  %99 = vmatprep.subr.mxu0 %v39_v10  ;;  %v31_v18 = vld [vmem:[#allocation2 + $0x8] sm:$0xff]  ;;  %v33_v19 = vld [vmem:[#allocation2 + $0x18] sm:$0xff]  ;;  %v30_v20 = vld [vmem:[#allocation2] sm:$0xff] }
  0x15   :  { %170 = vmatprep.subr.mxu1 %v41_v11  ;;  %100 = vmatpush1.msra.mxu0 %v38_v12  ;;  %v32_v21 = vld [vmem:[#allocation2 + $0x10] sm:$0xff]  ;;  %v29_v22 = vld [vmem:[%s330_s1] sm:$0xff]  ;;  %s267_s1 = scalar_lea.vmem %s226_s23, 512 }
  0x16   :  { %171 = vmatpush1.msra.mxu1 %v40_v13  ;;  %101 = vmatprep.subr.mxu0 %v35_v14  ;;  %v50_v23 = vld [vmem:[%s331_s2] sm:$0xff]  ;;  %p268_p5 = scmp.ne.s32.totalorder %s226_s23, %s267_s1  ;;  %p273_p7 = scmp.lt.s32.totalorder %s267_s1, %s267_s1 }
  0x17   :  { %172 = vmatprep.subr.mxu1 %v37_v15  ;;  %102 = vmatpush1.msra.mxu0 %v34_v16 }
  0x18   :  { %173 = vmatpush1.msra.mxu1 %v36_v17  ;;  %103 = vmatprep.subr.mxu0 %v31_v18  ;;  %p274_p8 = por %p273_p7, %p272_p6 }
  0x19   :  { %174 = vmatprep.subr.mxu1 %v33_v19  ;;  %104 = vmatpush1.msra.mxu0 %v30_v20 }
  0x1a   :  { %175 = vmatpush1.msra.mxu1 %v32_v21  ;;  %236 = vmatmul.mubr.msk.f32.vlgmr.msra.gmra.mxu0 %vm56_vm1, %v29_v22  ;;  %p275_p9 = pnand %p274_p8, %p268_p5 }
  0x1b   :  { %239 = vmatmul.mubr.msk.f32.vlgmr.msra.gmra.mxu1 %vm56_vm1, %v29_v22  ;;  %53 = vperm.xlu0 %246, %v50_v23  }
  0x96   :  { %v54_v24 = vpop.permute.xlu0 %53 }
  0xda   :  { %v139_v25 = vpop.f32.mrf.mxu0 }
  0xdb   :  { %v210_v26 = vpop.f32.mrf.mxu1  ;;  %v140_v27 = vadd.f32 %v139_v25, %v54_v24 }
  0xdc   :  { %v211_v28 = vadd.f32 %v210_v26, %v54_v24  ;;  %v141_v29 = vpop.f32.mrf.mxu0 }
  0xdd   :  { %v212_v30 = vpop.f32.mrf.mxu1  ;;  %215 = vst [vmem:[#allocation5] sm:$0xff] %v140_v27  ;;  %v142_v31 = vadd.f32 %v141_v29, %v54_v24 }
  0xde   :  { %217 = vst [vmem:[#allocation5 + $0x10] sm:$0xff] %v211_v28  ;;  %v213_v32 = vadd.f32 %v212_v30, %v54_v24 }
  0xdf   :  { %216 = vst [vmem:[#allocation5 + $0x8] sm:$0xff] %v142_v31 }
  0xe0   :  { %218 = vst [vmem:[#allocation5 + $0x18] sm:$0xff] %v213_v32 }
  0xe1   :  { %278 = shalt.err (!%p275_p9)
}
  0xe2   :  { %228 = dma.vmem_to_hbm [thread:$0]  %s226_s23, 512, %s332_s3, [#allocation4]  }
  0xe3   :  { %289 = dma.done.wait [#allocation4], 512  }
  0xe4   :  { %290 = vsyncadd [#allocation4], 4294966784 }
  0xe5   :  { %232 = vsyncpa [#allocation3], 1 }
  0xe6   :  { %233 = vsyncpa [#allocation4], 1 }

</bundles_post_ra>
